<compile_context>
chip_gen: v7x
topology: tpu7x:2x2x1
jax: 0.10.0
libtpu: 0.0.40
codegen_flags: <defaults>
</compile_context>

<pallas_src>
import numpy as np

import jax
import jax.numpy as jnp
from jax.experimental import pallas as pl
from jax.experimental.pallas import tpu as pltpu

_LANE = 128      # lane width (last dim tiling unit)
_SUBLANE = 8     # sublane width (second-to-last dim tiling unit)
_COL_CAP = 2048  # max elements per retiled row (multiple of 128)


def _copy_kernel(x_ref, o_ref):
    # Straight unmasked vld/vst memcpy of a lane-dense tile.
    o_ref[...] = x_ref[...]


def _vmem_budget():
    """Return (target_block_bytes, vmem_limit_bytes) per TPU generation."""
    try:
        vmem_phys = pltpu.get_tpu_info().vmem_capacity_bytes
    except Exception:
        vmem_phys = 64 << 20  # conservative default: assume v7x-class VMEM
    if vmem_phys >= (96 << 20):
        # v5e / v6e: 128 MiB physical VMEM -> 8 MiB blocks, 32 MiB in flight.
        return 8 << 20, 64 << 20
    # v7x: 64 MiB physical VMEM -> cap at 4 MiB blocks, 16 MiB in flight.
    return 4 << 20, 48 << 20


def _choose_retile(total):
    """Pick a lane-dense (rows, cols) factorization of `total`.

    cols is a multiple of 128 that divides `total` (<= _COL_CAP), preferring a
    choice that leaves rows >= 8 so blocks are sublane-dense as well.
    """
    k = total // _LANE
    cap = min(k, _COL_CAP // _LANE)
    divisors = [d for d in range(1, cap + 1) if k % d == 0]  # always has 1
    dense = [d for d in divisors if total // (_LANE * d) >= _SUBLANE]
    d = max(dense) if dense else max(divisors)
    cols = _LANE * d
    return total // cols, cols


def flatten(x: jax.Array) -> jax.Array:
    """Pallas-project equivalent of torch's x.view(x.size(0), -1).

    Flatten of a contiguous array is a pure view; the fast path is a free
    metadata reshape with no kernel launch and no HBM traffic.
    """
    b = x.shape[0]
    flat = int(np.prod(x.shape[1:])) if x.ndim > 1 else 1
    return jnp.reshape(x, (b, flat))


def flatten_copy(x: jax.Array) -> jax.Array:
    """Materializing variant: produces a fresh (B, flat) buffer via a
    lane-dense tiled Pallas copy (use only when a new buffer is required)."""
    b = x.shape[0]
    flat = int(np.prod(x.shape[1:])) if x.ndim > 1 else 1
    total = b * flat
    itemsize = jnp.dtype(x.dtype).itemsize

    # Retile over total elements so blocks are (8,128)-dense whenever possible.
    if total % _LANE == 0:
        rows, cols = _choose_retile(total)
    else:
        # Rare: element count not a multiple of 128 -> keep (B, flat) layout;
        # the last column tile uses masked edge stores.
        rows, cols = b, flat

    x2 = jnp.reshape(x, (rows, cols))  # free metadata reshape in the wrapper

    block_bytes, vmem_limit = _vmem_budget()

    # Column tile: full extent, or a 128-multiple cap (masked edge if ragged).
    tn = cols if cols <= _COL_CAP else _COL_CAP
    # Row tile: multiple of 8 sized to the per-generation block budget, or the
    # full extent when the array is small.
    target_rows = max(_SUBLANE,
                      (block_bytes // (tn * itemsize)) // _SUBLANE * _SUBLANE)
    tm = rows if rows <= target_rows else target_rows

    grid = (pl.cdiv(rows, tm), pl.cdiv(cols, tn))
    spec = pl.BlockSpec((tm, tn), lambda i, j: (i, j))

    out = pl.pallas_call(
        _copy_kernel,
        out_shape=jax.ShapeDtypeStruct((rows, cols), x.dtype),
        grid=grid,
        in_specs=[spec],
        out_specs=spec,
        compiler_params=pltpu.CompilerParams(
            dimension_semantics=("parallel", "parallel"),
            vmem_limit_bytes=vmem_limit),
        cost_estimate=pl.CostEstimate(
            flops=0,
            transcendentals=0,
            bytes_accessed=2 * total * itemsize),
    )(x2)

    return jnp.reshape(out, (b, flat))  # free metadata reshape back


if __name__ == "__main__":
    key = jax.random.PRNGKey(0)
    # Small NCHW input consistent with the module's forward.
    x = jax.random.normal(key, (2, 4, 16, 16), dtype=jnp.float32)
    expected = np.asarray(x).reshape(x.shape[0], -1)

    # Fast path: free metadata reshape (the recommended default).
    out_view = flatten(x)
    jax.block_until_ready(out_view)
    assert out_view.shape == (2, 4 * 16 * 16), out_view.shape
    assert out_view.dtype == jnp.float32
    np.testing.assert_array_equal(np.asarray(out_view), expected)

    # Materializing path: run the Pallas copy kernel once.
    out_copy = flatten_copy(x)
    jax.block_until_ready(out_copy)
    assert out_copy.shape == (2, 4 * 16 * 16), out_copy.shape
    assert out_copy.dtype == jnp.float32
    np.testing.assert_array_equal(np.asarray(out_copy), expected)

    print("KERNEL_OK")
</pallas_src>

<mosaic_0001>
module attributes {stable_mosaic.version = 11 : i64} {
  func.func @_copy_kernel(%arg0: i32, %arg1: i32, %arg2: memref<8x256xf32, #tpu.memory_space<vmem>>, %arg3: memref<8x256xf32, #tpu.memory_space<vmem>>) attributes {dimension_semantics = [#tpu.dimension_semantics<parallel>, #tpu.dimension_semantics<parallel>], iteration_bounds = array<i64: 1, 1>, scalar_prefetch = 0 : i64, scratch_operands = 0 : i64, tpu.core_type = #tpu.core_type<tc>, window_params = [{transform_indices = @transform_0, window_bounds = array<i64: 8, 256>}, {transform_indices = @transform_1, window_bounds = array<i64: 8, 256>}]} {
    %c0 = arith.constant 0 : index
    %c0_0 = arith.constant 0 : index
    %0 = vector.load %arg2[%c0, %c0_0] : memref<8x256xf32, #tpu.memory_space<vmem>>, vector<8x256xf32>
    %c0_1 = arith.constant 0 : index
    %c0_2 = arith.constant 0 : index
    %1 = vector.load %arg3[%c0_1, %c0_2] : memref<8x256xf32, #tpu.memory_space<vmem>>, vector<8x256xf32>
    tpu.vector_store %arg3[%c0_1, %c0_2], %0 {strides = array<i32>} : memref<8x256xf32, #tpu.memory_space<vmem>>, vector<8x256xf32>,
    return
  }
  func.func @transform_0(%arg0: i32, %arg1: i32) -> (i32, i32) {
    %c0_i32 = arith.constant 0 : i32
    return %arg0, %arg1 : i32, i32
  }
  func.func @transform_1(%arg0: i32, %arg1: i32) -> (i32, i32) {
    %c0_i32 = arith.constant 0 : i32
    return %arg0, %arg1 : i32, i32
  }
}

</mosaic_0001>

<bundles_post_ra>
// kernel: tpu_custom_call.1
= control target key start
LH: loop header
LB: loop body
LE: loop exit
PB: predicated region body
PF: predicated region fallthrough
CT: control target
= control target key end

     0   :  { %6 = vsyncpa [#allocation3], 0  ;;  %s126_s0 = inlined_call_operand.hbm [shape: f32[8,256], index: 0, kind: input, shape index: {}]   ;;  %s127_s1 = inlined_call_operand.hbm [shape: f32[8,256], index: 1, kind: output, shape index: {}]  }
   0x1   :  { %7 = vsyncpa [#allocation4], 0  ;;  %s90_s6 = smov [#allocation2]   ;;  %s42_s10 = scalar_lea.hbm %s126_s0, 256 }
   0x2   :  { %s14_s7 = sshll.u32 %s90_s6, 4  ;;  %p43_p0 = scmp.ne.s32.totalorder %s126_s0, %s42_s10  ;;  %s15_s7 = int_to_ptr.vmem [resolvable:$true] %s14_s7 }
   0x3   :  { %p46_p1 = scmp.lt.u32.totalorder %s42_s10, %s126_s0 }
   0x5   :  { %p48_p2 = pnand %p46_p1, %p43_p0 }
   0x7   :  { %51 = shalt.err (!%p48_p2)
}
   0x8   :  { %s52_s15 = scalar_lea.vmem %s15_s7, 256  ;;  %p57_p4 = scmp.lt.s32.totalorder %s15_s7, %s15_s7 }
   0x9   :  { %p53_p3 = scmp.ne.s32.totalorder %s15_s7, %s52_s15  ;;  %p58_p5 = scmp.lt.s32.totalorder %s52_s15, %s52_s15 }
   0xb   :  { %p59_p6 = por %p58_p5, %p57_p4 }
   0xd   :  { %p60_p7 = pnand %p59_p6, %p53_p3 }
   0xf   :  { %63 = shalt.err (!%p60_p7)
}
  0x10   :  { %17 = dma.hbm_to_vmem [thread:$0]  %s126_s0, 256, %s15_s7, [#allocation3]  }
  0x11   :  { %86 = dma.done.wait [#allocation3], 256  }
  0x12   :  { %87 = vsyncadd [#allocation3], 4294967040  ;;  %s91_s18 = smov [#allocation5]   ;;  %v21_v0 = vld [vmem:[#allocation2] sm:$0xff]  ;;  %v22_v1 = vld [vmem:[#allocation2 + $0x8] sm:$0xff] }
  0x13   :  { %s31_s19 = sshll.u32 %s91_s18, 4  ;;  %23 = vst [vmem:[#allocation5] sm:$0xff] %v21_v0  ;;  %24 = vst [vmem:[#allocation5 + $0x8] sm:$0xff] %v22_v1  ;;  %s32_s19 = int_to_ptr.vmem [resolvable:$true] %s31_s19 }
  0x14   :  { %s64_s20 = scalar_lea.vmem %s32_s19, 256  ;;  %p69_p9 = scmp.lt.s32.totalorder %s32_s19, %s32_s19 }
  0x15   :  { %p65_p8 = scmp.ne.s32.totalorder %s32_s19, %s64_s20  ;;  %p70_p10 = scmp.lt.s32.totalorder %s64_s20, %s64_s20 }
  0x17   :  { %p71_p11 = por %p70_p10, %p69_p9 }
  0x19   :  { %p72_p12 = pnand %p71_p11, %p65_p8 }
  0x1b   :  { %75 = shalt.err (!%p72_p12)
}
  0x1c   :  { %s76_s0 = scalar_lea.hbm %s127_s1, 256 }
  0x1d   :  { %p77_p13 = scmp.ne.s32.totalorder %s127_s1, %s76_s0  ;;  %p80_p0 = scmp.lt.u32.totalorder %s76_s0, %s127_s1 }
  0x1f   :  { %p82_p1 = pnand %p80_p0, %p77_p13 }
  0x21   :  { %85 = shalt.err (!%p82_p1)
}
  0x22   :  { %34 = dma.vmem_to_hbm [thread:$0]  %s32_s19, 256, %s127_s1, [#allocation4]  }
  0x23   :  { %88 = dma.done.wait [#allocation4], 256  }
  0x24   :  { %89 = vsyncadd [#allocation4], 4294967040 }
  0x25   :  { %38 = vsyncpa [#allocation3], 1 }
  0x26   :  { %39 = vsyncpa [#allocation4], 1 }

</bundles_post_ra>
